<compile_context>
chip_gen: v6e
topology: v6e:2x2x1
jax: 0.10.0
libtpu: 0.0.40
codegen_flags: <defaults>
</compile_context>

<pallas_src>
import functools
import math

import jax
import jax.numpy as jnp
from jax.experimental import pallas as pl
from jax.experimental.pallas import tpu as pltpu

_LANE = 128      # vreg lane width
_SUBLANE = 8     # vreg sublane count (f32)


def _round_up(x, m):
    return ((x + m - 1) // m) * m


def _gelu(x, *, approximate=False):
    if approximate:
        # tanh approx -> EUP slot (nearly free); slight numerics delta vs torch default.
        return jax.nn.gelu(x, approximate=True)
    # Exact erf formulation == torch.nn.GELU() default.
    return 0.5 * x * (1.0 + jax.lax.erf(x * (1.0 / math.sqrt(2.0))))


def _mlp_kernel(n_layers, approx_gelu, x_ref, *refs):
    """Fused MLP for one batch tile, entirely in VMEM.

    refs layout: w_0, b_0, w_1, b_1, ..., w_{L-1}, b_{L-1}, out_ref
    """
    out_ref = refs[-1]
    h = x_ref[...]                                   # compute dtype (f32 or bf16)
    for i in range(n_layers):
        w = refs[2 * i][...]
        b = refs[2 * i + 1][...].astype(jnp.float32)
        # MXU matmul with f32 accumulation; bias add + GELU in f32.
        h = jnp.dot(h, w, preferred_element_type=jnp.float32) + b
        if i < n_layers - 1:                         # no activation after final Linear
            h = _gelu(h, approximate=approx_gelu).astype(w.dtype)
    out_ref[...] = h.astype(out_ref.dtype)


def base_classifier_forward(x, params, *, block_batch=128,
                            compute_dtype=jnp.float32, approx_gelu=False):
    """Forward pass of BaseClassifier.

    x: [batch, input_size] float array.
    params: list of (W [d_in, d_out], b [d_out]) for every Linear layer
            (W is the transpose of PyTorch's [out, in] layout).
    Returns [batch, output_size] in x.dtype.
    """
    B, D_in = x.shape
    n_layers = len(params)
    out_dim = params[-1][0].shape[1]
    compute_dtype = jnp.dtype(compute_dtype)

    # ---- lane-pad every feature dim to a multiple of 128 (dense vregs, unmasked vst) ----
    dims = [D_in] + [w.shape[1] for (w, _) in params]
    dims_pad = [_round_up(d, _LANE) for d in dims]

    # ---- batch tiling: pad batch, pick an MXU-friendly M tile, keep >=2 grid steps ----
    B_pad = _round_up(B, _SUBLANE)
    bb = min(_round_up(block_batch, _SUBLANE), B_pad)
    if B_pad // bb < 2 and B_pad >= 2 * _SUBLANE:
        # ensure the "parallel" batch axis has >=2 steps (both v7x TensorCores used)
        bb = _round_up((B_pad + 1) // 2, _SUBLANE)
    B_pad = _round_up(B_pad, bb)
    grid = (B_pad // bb,)

    # ---- pad & cast operands (zero padding is exact: 0-cols stay 0 through GELU) ----
    x_p = jnp.pad(x.astype(compute_dtype),
                  ((0, B_pad - B), (0, dims_pad[0] - D_in)))

    flat_args = [x_p]
    in_specs = [pl.BlockSpec((bb, dims_pad[0]), lambda i: (i, 0))]
    weight_bytes = 0
    for li, (w, b) in enumerate(params):
        d_in, d_out = w.shape
        di_p, do_p = dims_pad[li], dims_pad[li + 1]
        w_p = jnp.pad(w.astype(compute_dtype),
                      ((0, di_p - d_in), (0, do_p - d_out)))
        b_p = jnp.pad(b.astype(jnp.float32), (0, do_p - d_out)).reshape(1, do_p)
        flat_args.append(w_p)
        # Grid-invariant operands: single-buffer (halves their VMEM footprint).
        in_specs.append(pl.BlockSpec((di_p, do_p), lambda i: (0, 0),
                                     pipeline_mode=pl.Buffered(1)))
        flat_args.append(b_p)
        in_specs.append(pl.BlockSpec((1, do_p), lambda i: (0, 0),
                                     pipeline_mode=pl.Buffered(1)))
        weight_bytes += w_p.size * w_p.dtype.itemsize + b_p.size * 4

    out_dim_pad = dims_pad[-1]
    out_specs = pl.BlockSpec((bb, out_dim_pad), lambda i: (i, 0))

    # ---- explicit VMEM budget: 2x (x, out) tiles + 1x weights + live f32 activations ----
    itemsize = compute_dtype.itemsize
    x_tile = bb * dims_pad[0] * itemsize
    out_tile = bb * out_dim_pad * jnp.dtype(x.dtype).itemsize
    act_bytes = sum(bb * d * 4 for d in dims_pad[1:])          # f32 intermediates
    vmem_needed = 2 * x_tile + 2 * out_tile + weight_bytes + 2 * act_bytes
    # 2x headroom, floor 32 MiB, cap 64 MiB (valid on v7x's smaller VMEM too)
    vmem_limit = int(min(max(2 * vmem_needed, 32 << 20), 64 << 20))

    flops = 2 * B_pad * sum(dims_pad[i] * dims_pad[i + 1] for i in range(n_layers))
    transcendentals = B_pad * sum(dims_pad[1:-1])              # one erf/tanh per hidden unit
    bytes_accessed = int(x_p.size * itemsize + weight_bytes
                         + B_pad * out_dim_pad * jnp.dtype(x.dtype).itemsize)

    out_p = pl.pallas_call(
        functools.partial(_mlp_kernel, n_layers, approx_gelu),
        out_shape=jax.ShapeDtypeStruct((B_pad, out_dim_pad), x.dtype),
        grid_spec=pltpu.PrefetchScalarGridSpec(
            num_scalar_prefetch=0,
            grid=grid,
            in_specs=in_specs,
            out_specs=out_specs,
        ),
        compiler_params=pltpu.CompilerParams(
            dimension_semantics=("parallel",),
            vmem_limit_bytes=vmem_limit,
        ),
        cost_estimate=pl.CostEstimate(
            flops=int(flops),
            transcendentals=int(transcendentals),
            bytes_accessed=bytes_accessed,
        ),
    )(*flat_args)

    # Strip batch / lane padding.
    return out_p[:B, :out_dim]


def init_params(key, input_size, hidden_size, output_size):
    """Deterministic init mimicking nn.Linear's U(-1/sqrt(fan_in), 1/sqrt(fan_in))."""
    dims = [input_size] + list(hidden_size) + [output_size]
    params = []
    for i in range(len(dims) - 1):
        d_in, d_out = dims[i], dims[i + 1]
        key, kw, kb = jax.random.split(key, 3)
        bound = 1.0 / math.sqrt(d_in)
        w = jax.random.uniform(kw, (d_in, d_out), jnp.float32, -bound, bound)
        b = jax.random.uniform(kb, (d_out,), jnp.float32, -bound, bound)
        params.append((w, b))
    return params


def reference_forward(x, params):
    h = x
    for i, (w, b) in enumerate(params):
        h = jnp.dot(h, w, precision=jax.lax.Precision.HIGHEST) + b
        if i < len(params) - 1:
            h = 0.5 * h * (1.0 + jax.lax.erf(h / math.sqrt(2.0)))
    return h


if __name__ == "__main__":
    # Small shapes consistent with the module: x is [batch, input_size].
    # Ragged batch (30) and non-multiple-of-128 dims exercise the padding path;
    # the padded batch (32) tiles into 2 grid steps of 16 rows.
    batch, input_size, hidden_size, output_size = 30, 50, [64, 32], 10

    key = jax.random.PRNGKey(0)
    key, kx = jax.random.split(key)
    x = jax.random.normal(kx, (batch, input_size), jnp.float32)
    params = init_params(key, input_size, hidden_size, output_size)

    out = base_classifier_forward(x, params, block_batch=128)
    out = jax.block_until_ready(out)

    ref = reference_forward(x, params)
    assert out.shape == (batch, output_size)
    assert jnp.allclose(out, ref, atol=1e-5, rtol=1e-4), "mismatch vs JAX reference"

    print("KERNEL_OK")
</pallas_src>

<mosaic_0001>
module attributes {stable_mosaic.version = 11 : i64} {
  func.func @_mlp_kernel(%arg0: i32, %arg1: memref<16x128xf32, #tpu.memory_space<vmem>>, %arg2: memref<128x128xf32, #tpu.memory_space<vmem>>, %arg3: memref<1x128xf32, #tpu.memory_space<vmem>>, %arg4: memref<128x128xf32, #tpu.memory_space<vmem>>, %arg5: memref<1x128xf32, #tpu.memory_space<vmem>>, %arg6: memref<128x128xf32, #tpu.memory_space<vmem>>, %arg7: memref<1x128xf32, #tpu.memory_space<vmem>>, %arg8: memref<16x128xf32, #tpu.memory_space<vmem>>) attributes {dimension_semantics = [#tpu.dimension_semantics<parallel>], iteration_bounds = array<i64: 2>, scalar_prefetch = 0 : i64, scratch_operands = 0 : i64, tpu.core_type = #tpu.core_type<tc>, window_params = [{transform_indices = @transform_0, window_bounds = array<i64: 16, 128>}, {pipeline_mode = #tpu.pipeline_mode<synchronous>, transform_indices = @transform_1, window_bounds = array<i64: 128, 128>}, {pipeline_mode = #tpu.pipeline_mode<synchronous>, transform_indices = @transform_2, window_bounds = array<i64: 1, 128>}, {pipeline_mode = #tpu.pipeline_mode<synchronous>, transform_indices = @transform_3, window_bounds = array<i64: 128, 128>}, {pipeline_mode = #tpu.pipeline_mode<synchronous>, transform_indices = @transform_4, window_bounds = array<i64: 1, 128>}, {pipeline_mode = #tpu.pipeline_mode<synchronous>, transform_indices = @transform_5, window_bounds = array<i64: 128, 128>}, {pipeline_mode = #tpu.pipeline_mode<synchronous>, transform_indices = @transform_6, window_bounds = array<i64: 1, 128>}, {transform_indices = @transform_7, window_bounds = array<i64: 16, 128>}]} {
    %c0 = arith.constant 0 : index
    %c0_0 = arith.constant 0 : index
    %0 = vector.load %arg1[%c0, %c0_0] : memref<16x128xf32, #tpu.memory_space<vmem>>, vector<16x128xf32>
    %c0_1 = arith.constant 0 : index
    %c0_2 = arith.constant 0 : index
    %1 = vector.load %arg2[%c0_1, %c0_2] : memref<128x128xf32, #tpu.memory_space<vmem>>, vector<128x128xf32>
    %c0_3 = arith.constant 0 : index
    %c0_4 = arith.constant 0 : index
    %2 = vector.load %arg3[%c0_3, %c0_4] : memref<1x128xf32, #tpu.memory_space<vmem>>, vector<1x128xf32>
    %cst = arith.constant dense<0.000000e+00> : vector<16x128xf32>
    %3 = tpu.matmul %0, %1, %cst {dimension_numbers = #tpu.dot_dimension_numbers<[1], [0], [0], [1], [0, 0, 1, 1], [], []>} : vector<16x128xf32>, vector<128x128xf32>, vector<16x128xf32> -> vector<16x128xf32>
    %4 = vector.broadcast %2 : vector<1x128xf32> to vector<16x128xf32>
    %5 = arith.addf %3, %4 : vector<16x128xf32>
    %cst_5 = arith.constant 5.000000e-01 : f32
    %6 = vector.broadcast %cst_5 : f32 to vector<16x128xf32>
    %7 = arith.mulf %6, %5 : vector<16x128xf32>
    %cst_6 = arith.constant 0.707106769 : f32
    %8 = vector.broadcast %cst_6 : f32 to vector<16x128xf32>
    %9 = arith.mulf %5, %8 : vector<16x128xf32>
    %10 = math.erf %9 : vector<16x128xf32>
    %cst_7 = arith.constant 1.000000e+00 : f32
    %11 = vector.broadcast %cst_7 : f32 to vector<16x128xf32>
    %12 = arith.addf %11, %10 : vector<16x128xf32>
    %13 = arith.mulf %7, %12 : vector<16x128xf32>
    %c0_8 = arith.constant 0 : index
    %c0_9 = arith.constant 0 : index
    %14 = vector.load %arg4[%c0_8, %c0_9] : memref<128x128xf32, #tpu.memory_space<vmem>>, vector<128x128xf32>
    %c0_10 = arith.constant 0 : index
    %c0_11 = arith.constant 0 : index
    %15 = vector.load %arg5[%c0_10, %c0_11] : memref<1x128xf32, #tpu.memory_space<vmem>>, vector<1x128xf32>
    %cst_12 = arith.constant dense<0.000000e+00> : vector<16x128xf32>
    %16 = tpu.matmul %13, %14, %cst_12 {dimension_numbers = #tpu.dot_dimension_numbers<[1], [0], [0], [1], [0, 0, 1, 1], [], []>} : vector<16x128xf32>, vector<128x128xf32>, vector<16x128xf32> -> vector<16x128xf32>
    %17 = vector.broadcast %15 : vector<1x128xf32> to vector<16x128xf32>
    %18 = arith.addf %16, %17 : vector<16x128xf32>
    %cst_13 = arith.constant 5.000000e-01 : f32
    %19 = vector.broadcast %cst_13 : f32 to vector<16x128xf32>
    %20 = arith.mulf %19, %18 : vector<16x128xf32>
    %cst_14 = arith.constant 0.707106769 : f32
    %21 = vector.broadcast %cst_14 : f32 to vector<16x128xf32>
    %22 = arith.mulf %18, %21 : vector<16x128xf32>
    %23 = math.erf %22 : vector<16x128xf32>
    %cst_15 = arith.constant 1.000000e+00 : f32
    %24 = vector.broadcast %cst_15 : f32 to vector<16x128xf32>
    %25 = arith.addf %24, %23 : vector<16x128xf32>
    %26 = arith.mulf %20, %25 : vector<16x128xf32>
    %c0_16 = arith.constant 0 : index
    %c0_17 = arith.constant 0 : index
    %27 = vector.load %arg6[%c0_16, %c0_17] : memref<128x128xf32, #tpu.memory_space<vmem>>, vector<128x128xf32>
    %c0_18 = arith.constant 0 : index
    %c0_19 = arith.constant 0 : index
    %28 = vector.load %arg7[%c0_18, %c0_19] : memref<1x128xf32, #tpu.memory_space<vmem>>, vector<1x128xf32>
    %cst_20 = arith.constant dense<0.000000e+00> : vector<16x128xf32>
    %29 = tpu.matmul %26, %27, %cst_20 {dimension_numbers = #tpu.dot_dimension_numbers<[1], [0], [0], [1], [0, 0, 1, 1], [], []>} : vector<16x128xf32>, vector<128x128xf32>, vector<16x128xf32> -> vector<16x128xf32>
    %30 = vector.broadcast %28 : vector<1x128xf32> to vector<16x128xf32>
    %31 = arith.addf %29, %30 : vector<16x128xf32>
    %c0_21 = arith.constant 0 : index
    %c0_22 = arith.constant 0 : index
    %32 = vector.load %arg8[%c0_21, %c0_22] : memref<16x128xf32, #tpu.memory_space<vmem>>, vector<16x128xf32>
    tpu.vector_store %arg8[%c0_21, %c0_22], %31 {strides = array<i32>} : memref<16x128xf32, #tpu.memory_space<vmem>>, vector<16x128xf32>,
    return
  }
  func.func @transform_0(%arg0: i32) -> (i32, i32) {
    %c0_i32 = arith.constant 0 : i32
    %c0_i32_0 = arith.constant 0 : i32
    return %arg0, %c0_i32 : i32, i32
  }
  func.func @transform_1(%arg0: i32) -> (i32, i32) {
    %c0_i32 = arith.constant 0 : i32
    %c0_i32_0 = arith.constant 0 : i32
    %c0_i32_1 = arith.constant 0 : i32
    return %c0_i32, %c0_i32_0 : i32, i32
  }
  func.func @transform_2(%arg0: i32) -> (i32, i32) {
    %c0_i32 = arith.constant 0 : i32
    %c0_i32_0 = arith.constant 0 : i32
    %c0_i32_1 = arith.constant 0 : i32
    return %c0_i32, %c0_i32_0 : i32, i32
  }
  func.func @transform_3(%arg0: i32) -> (i32, i32) {
    %c0_i32 = arith.constant 0 : i32
    %c0_i32_0 = arith.constant 0 : i32
    %c0_i32_1 = arith.constant 0 : i32
    return %c0_i32, %c0_i32_0 : i32, i32
  }
  func.func @transform_4(%arg0: i32) -> (i32, i32) {
    %c0_i32 = arith.constant 0 : i32
    %c0_i32_0 = arith.constant 0 : i32
    %c0_i32_1 = arith.constant 0 : i32
    return %c0_i32, %c0_i32_0 : i32, i32
  }
  func.func @transform_5(%arg0: i32) -> (i32, i32) {
    %c0_i32 = arith.constant 0 : i32
    %c0_i32_0 = arith.constant 0 : i32
    %c0_i32_1 = arith.constant 0 : i32
    return %c0_i32, %c0_i32_0 : i32, i32
  }
  func.func @transform_6(%arg0: i32) -> (i32, i32) {
    %c0_i32 = arith.constant 0 : i32
    %c0_i32_0 = arith.constant 0 : i32
    %c0_i32_1 = arith.constant 0 : i32
    return %c0_i32, %c0_i32_0 : i32, i32
  }
  func.func @transform_7(%arg0: i32) -> (i32, i32) {
    %c0_i32 = arith.constant 0 : i32
    %c0_i32_0 = arith.constant 0 : i32
    return %arg0, %c0_i32 : i32, i32
  }
}

</mosaic_0001>

<bundles_post_ra>
// kernel: tpu_custom_call.1
= control target key start
LH: loop header
LB: loop body
LE: loop exit
PB: predicated region body
PF: predicated region fallthrough
CT: control target
= control target key end

     0   :  { %s1508_s0 = inlined_call_operand.hbm [shape: f32[32,128], index: 0, kind: input, shape index: {}]   ;;  %s1509_s1 = inlined_call_operand.hbm [shape: f32[128,128], index: 1, kind: input, shape index: {}]   ;;  %s1510_s2 = inlined_call_operand.vmem [shape: f32[1,128], index: 2, kind: input, shape index: {}]   ;;  %s1511_s3 = inlined_call_operand.hbm [shape: f32[128,128], index: 3, kind: input, shape index: {}]   ;;  %s1512_s4 = inlined_call_operand.vmem [shape: f32[1,128], index: 4, kind: input, shape index: {}]   ;;  %s1513_s5 = inlined_call_operand.hbm [shape: f32[128,128], index: 5, kind: input, shape index: {}]   ;;  %s1514_s6 = inlined_call_operand.vmem [shape: f32[1,128], index: 6, kind: input, shape index: {}]   ;;  %s1515_s7 = inlined_call_operand.hbm [shape: f32[32,128], index: 7, kind: output, shape index: {}]  }
   0x1   :  { %1522 = sst [smem:[#allocation15_spill]] %s1509_s1 }
   0x2   :  { %12 = vsyncpa [#allocation3], 0 }
   0x3   :  { %14 = vsyncpa [#allocation3 + $0x1], 0 }
   0x4   :  { %15 = vsyncpa [#allocation6], 0 }
   0x5   :  { %16 = vsyncpa [#allocation9], 0 }
   0x6   :  { %17 = vsyncpa [#allocation4], 0 }
   0x7   :  { %19 = vsyncpa [#allocation4 + $0x1], 0  ;;  %s1279_s24 = smov 0   ;;  %s1281_s25 = smov 0  }
   0x8   :  { %s1283_s26 = smov 0   ;;  %s1285_s27 = smov 0  }
   0x9 LB: > { %s1300_s28 = sadd.s32 4294967295, %s1228_s27   ;;  %s777_s29 = sadd.s32 4294967294, %s1228_s27   ;;  %s1228_s27 = sphi %s1285_s27, %s1544_s27   ;;  %s1224_s26 = sphi %s1283_s26, %s1543_s26   ;;  %s1220_s25 = sphi %s1281_s25, %s1542_s25   ;;  %s1216_s24 = sphi %s1279_s24, %s1541_s24  }
   0xa   : > { %p45_p0 = scmp.ne.s32.totalorder %s1220_s25, %s1216_s24  ;;  %p1516_p1 = scmp.eq.s32.totalorder %s1300_s28, 0 }
   0xb   : > { %p195_p2 = scmp.eq.s32.totalorder %s1300_s28, 1  ;;  %p201_p3 = scmp.eq.s32.totalorder %s777_s29, 1 }
   0xc   : > { %p1309_p4 = por %p1516_p1, %p45_p0  ;;  %p778_p5 = scmp.ge.s32.totalorder %s1228_s27, 1 }
   0xd   : > { %p1314_p6 = por %p201_p3, %p45_p0  ;;  %p208_p7 = scmp.lt.s32.totalorder %s1228_s27, 3 }
   0xe   : > { %s1523_s30 = scalar_select %p1309_p4, 1, 0 }
   0xf   : > { %s1524_s8 = scalar_select %p1314_p6, 1, 0 }
  0x10   : > { %p1319_p8 = pnand %p778_p5, %p208_p7  ;;  %s1230_s10 = smov [#allocation5]  }
  0x11   : > { %s220_s11 = sshll.u32 %s1230_s10, 4  ;;  %s1231_s13 = smov [#allocation7]   ;;  %s221_s11 = int_to_ptr.vmem [resolvable:$true] %s220_s11 }
  0x12   : > { %s1525_s9 = scalar_select %p1319_p8, 1, 0 }
  0x13   : > { %p977_p9 = pneg %p1319_p8  ;;  %s236_s14 = sshll.u32 %s1231_s13, 4  ;;  %s237_s14 = int_to_ptr.vmem [resolvable:$true] %s236_s14 }
  0x14   : > { %s1232_s15 = smov [#allocation8]   ;;  %s1061_s17 = scalar_lea.vmem %s221_s11, 2048 }
  0x15   : > { %p1328_p11 = pnand %p977_p9, %p1516_p1  ;;  %s252_s16 = sshll.u32 %s1232_s15, 4  ;;  %s253_s16 = int_to_ptr.vmem [resolvable:$true] %s252_s16 }
  0x16   : > { %p1062_p13 = scmp.ne.s32.totalorder %s221_s11, %s1061_s17  ;;  %p1069_p5 = scmp.lt.s32.totalorder %s221_s11, %s221_s11 }
  0x17   : > { %p1052_p12 = pneg %p1328_p11  ;;  %p1070_p7 = scmp.lt.s32.totalorder %s1061_s17, %s1061_s17 }
  0x19   : > { %p1064_p0 = pnand %p1062_p13, %p1052_p12  ;;  %p1071_p9 = por %p1070_p7, %p1069_p5 }
  0x1b   : > { %p1065_p3 = pneg %p1064_p0 }
  0x1d   : > { %p1072_p10 = pnand %p1071_p9, %p1065_p3 }
  0x1f   : > { %1075 = shalt.err (!%p1072_p10)
}
  0x20   : > { %s1517_s18 = smov 128   ;;  %s1518_s19 = smov 8  }
  0x21   : > { %s1527_s1 = sld [smem:[#allocation15_spill]]  ;;  %s1087_s22 = scalar_lea.vmem %s237_s14, 2048 }
  0x22   : > { %p1088_p13 = scmp.ne.s32.totalorder %s237_s14, %s1087_s22  ;;  %p1095_p3 = scmp.lt.s32.totalorder %s237_s14, %s237_s14 }
  0x23   : > { %p1096_p10 = scmp.lt.s32.totalorder %s1087_s22, %s1087_s22 }
  0x24   : > { %p1090_p0 = pnand %p1088_p13, %p1052_p12 }
  0x25   : > { %p1097_p7 = por %p1096_p10, %p1095_p3 }
  0x26   : > { %p1091_p5 = pneg %p1090_p0 }
  0x27   : > { %980 = dma.hbm_to_vmem [thread:$0]  (!%p1328_p11), %s1527_s1, 2048, %s221_s11, [#allocation6], %s1517_s18, %s1517_s18, %s1518_s19  }
  0x28   : > { %p1098_p9 = pnand %p1097_p7, %p1091_p5 }
  0x2a   : > { %1101 = shalt.err (!%p1098_p9)
}
  0x2b   : > { %983 = dma.hbm_to_vmem [thread:$0]  (!%p1328_p11), %s1511_s3, 2048, %s237_s14, [#allocation6], %s1517_s18, %s1517_s18, %s1518_s19  }
  0x2c   : > { %s1113_s10 = scalar_lea.vmem %s253_s16, 2048  ;;  %p1121_p3 = scmp.lt.s32.totalorder %s253_s16, %s253_s16 }
  0x2d   : > { %p1114_p1 = scmp.ne.s32.totalorder %s253_s16, %s1113_s10  ;;  %p1122_p5 = scmp.lt.s32.totalorder %s1113_s10, %s1113_s10 }
  0x2f   : > { %p1116_p13 = pnand %p1114_p1, %p1052_p12  ;;  %p1123_p10 = por %p1122_p5, %p1121_p3 }
  0x31   : > { %p1117_p0 = pneg %p1116_p13 }
  0x33   : > { %p1124_p7 = pnand %p1123_p10, %p1117_p0 }
  0x35   : > { %1127 = shalt.err (!%p1124_p7)
}
  0x36   : > { %986 = dma.hbm_to_vmem [thread:$0]  (!%p1328_p11), %s1513_s5, 2048, %s253_s16, [#allocation9], %s1517_s18, %s1517_s18, %s1518_s19  }
  0x37   : > { %s1368_s14 = sadd.s32 1, %s1228_s27   ;;  %s32_s15 = sadd.s32 1, %s1224_s26 }
  0x38   : > { %s29_s12 = ssub.s32 %s1228_s27, %s1368_s14  ;;  %p39_p12 = scmp.ne.s32.totalorder %s1224_s26, %s1220_s25 }
  0x39   : > { %p30_p1 = scmp.eq.s32.totalorder %s29_s12, 0  ;;  %p40_p9 = scmp.eq.s32.totalorder %s1228_s27, 0 }
  0x3a   : > { %p998_p13 = scmp.lt.s32.totalorder %s1228_s27, 2  ;;  %p1382_p3 = por %p195_p2, %p39_p12 }
  0x3b   : > { %s1378_s17 = scalar_select %p30_p1, %s1224_s26, %s32_s15  }
  0x3c   : > { %p41_p0 = por %p40_p9, %p39_p12  ;;  %s269_s21 = sand.u32 1, %s1224_s26  }
  0x3d   : > { %s1528_s20 = scalar_select %p1382_p3, 1, 0 }
  0x3e   : > { %s800_s22 = sshll.u32 %s1228_s27, 8  ;;  %s783_s16 = sshll.u32 %s269_s21, 4 }
  0x3f   : > { %s1391_s10 = scalar_lea.hbm %s1508_s0, %s800_s22  ;;  %s273_s11 = scalar_lea.vmem [#allocation2], %s783_s16 }
  0x40   : > { %s280_s13 = sshll.u32 %s273_s11, 4  ;;  %p1393_p11 = pnand %p998_p13, %p41_p0  ;;  %s1397_s13 = int_to_ptr.vmem [resolvable:$true] %s280_s13 }
  0x41   : > { %s1399_s15 = scalar_lea.sflag [#allocation3], %s269_s21  ;;  %s1128_s18 = scalar_lea.hbm %s1391_s10, 256 }
  0x42   : > { %p1129_p2 = scmp.ne.s32.totalorder %s1391_s10, %s1128_s18  ;;  %p1130_p5 = pneg %p1393_p11 }
  0x43   : > { %s1133_s16 = scalar_lea.hbm %s1508_s0, 512  ;;  %p1134_p1 = scmp.lt.s32.totalorder %s1391_s10, %s1508_s0 }
  0x44   : > { %p1131_p10 = pnand %p1130_p5, %p1129_p2  ;;  %p1135_p12 = scmp.lt.s32.totalorder %s1133_s16, %s1128_s18 }
  0x46   : > { %p1132_p7 = pneg %p1131_p10  ;;  %p1136_p9 = por %p1135_p12, %p1134_p1 }
  0x48   : > { %p1137_p13 = pnand %p1136_p9, %p1132_p7 }
  0x4a   : > { %1140 = shalt.err (!%p1137_p13)
}
  0x4b   : > { %s1141_s21 = scalar_lea.vmem %s1397_s13, 256  ;;  %s1235_s19 = smov [#allocation2]  }
  0x4c   : > { %p1142_p0 = scmp.ne.s32.totalorder %s1397_s13, %s1141_s21  ;;  %s1146_s1 = sshll.u32 %s1235_s19, 4  ;;  %s1147_s1 = int_to_ptr.vmem [resolvable:$false] %s1146_s1 }
  0x4d   : > { %s1148_s22 = scalar_lea.vmem %s1147_s1, 512  ;;  %p1149_p10 = scmp.lt.s32.totalorder %s1397_s13, %s1147_s1 }
  0x4e   : > { %p1144_p6 = pnand %p1142_p0, %p1130_p5  ;;  %p1150_p3 = scmp.lt.s32.totalorder %s1148_s22, %s1141_s21 }
  0x50   : > { %p1145_p2 = pneg %p1144_p6  ;;  %p1151_p4 = por %p1150_p3, %p1149_p10 }
  0x52   : > { %p1152_p8 = pnand %p1151_p4, %p1145_p2 }
  0x54   : > { %1155 = shalt.err (!%p1152_p8)
}
  0x55   : > { %s1530_s18 = smov 8   ;;  %s1531_s23 = smov 128  }
  0x56   : > { %990 = dma.hbm_to_vmem [thread:$0]  (!%p1393_p11), %s1391_s10, 256, %s1397_s13, %s1399_s15, %s1531_s23, %s1531_s23, %s1530_s18  }
  0x57   : > { %p1532_p6 = scmp.ne.s32.totalorder %s1525_s9, 0 }
  0x58   : > { %s1426_s19 = sand.u32 (!%p1532_p6), 1, %s1220_s25   ;;  %p1533_p4 = scmp.ne.s32.totalorder (!%p1532_p6), %s1523_s30, 0 }
  0x59   : > { %292 = sbr.rel (%p1532_p6) target bundleno = 782 (0x30e), region = 48  ;;  %s787_s1 = sshll.u32 (!%p1532_p6), %s1426_s19, 4 }
  0x5a   : > { %s295_s16 = scalar_lea.sflag (!%p1532_p6), [#allocation3], %s1426_s19  ;;  %s1432_s12 = scalar_lea.vmem (!%p1532_p6), [#allocation2], %s787_s1 }
  0x5e   : > { %1199 = dma.done.wait (%p1533_p4), %s295_s16, 256  }
  0x5f   : > { %1201 = vsyncadd (%p1533_p4), %s295_s16, 4294967040  ;;  %p1534_p8 = scmp.eq.s32.totalorder %s1300_s28, 0 }
  0x61   : > { %1203 = dma.done.wait (%p1534_p8), [#allocation6], 4096   ;;  %p1535_p3 = pmov %p1534_p8 }
  0x63   : > { %1205 = vsyncadd (%p1535_p3), [#allocation6], 4294963200  ;;  %p1536_p11 = pmov %p1535_p3 }
  0x64   : > { %p1537_p5 = pmov %p1535_p3 }
  0x65   : > { %1207 = dma.done.wait (%p1536_p11), [#allocation9], 2048  }
  0x66   : > { %1209 = vsyncadd (%p1537_p5), [#allocation9], 4294965248  ;;  %v360_v0 = vld [vmem:[#allocation5 + $0x78] sm:$0xff]  ;;  %v359_v1 = vld [vmem:[#allocation5 + $0x70] sm:$0xff]  ;;  %s340_s11 = scalar_lea.vmem [#allocation10], %s787_s1  ;;  %s801_s22 = sshll.u32 %s1300_s28, 8 }
  0x67   : > { %856 = vmatprep.subr.mxu0 %v360_v0  ;;  %v358_v2 = vld [vmem:[#allocation5 + $0x68] sm:$0xff]  ;;  %v357_v3 = vld [vmem:[#allocation5 + $0x60] sm:$0xff]  ;;  %v356_v5 = vld [vmem:[#allocation5 + $0x58] sm:$0xff]  ;;  %s675_s21 = sshll.u32 %s340_s11, 4  ;;  %s1465_s16 = scalar_lea.hbm %s1515_s7, %s801_s22  ;;  %s1460_s21 = int_to_ptr.vmem [resolvable:$true] %s675_s21 }
  0x68   : > { %857 = vmatpush3.msra.mxu0 %v360_v0  ;;  %v343_v4 = vld [vmem:[%s1432_s12] sm:$0xff]  ;;  %v468_v6 = vld [vmem:[#allocation7 + $0x78] sm:$0xff]  ;;  %v466_v9 = vld [vmem:[#allocation7 + $0x68] sm:$0xff]  ;;  %s1156_s1 = scalar_lea.vmem %s1460_s21, 256  ;;  %p1538_p1 = scmp.ne.s32.totalorder %s1528_s20, 0 }
  0x69   : > { %858 = vmatprep.subr.mxu0 %v359_v1  ;;  %888 = vmatprep.mubr.f32.mxu0 %v343_v4  ;;  %v467_v7 = vld [vmem:[#allocation7 + $0x70] sm:$0xff]  ;;  %v354_v10 = vld [vmem:[#allocation5 + $0x48] sm:$0xff]  ;;  %v353_v11 = vld [vmem:[#allocation5 + $0x40] sm:$0xff]  ;;  %p1157_p7 = scmp.ne.s32.totalorder %s1460_s21, %s1156_s1  ;;  %s1236_s28 = smov [#allocation10]  }
  0x6a   : > { %859 = vmatpush3.msra.mxu0 %v359_v1  ;;  %891 = vmatprep.subr.mxu1 %v468_v6  ;;  %v355_v8 = vld [vmem:[#allocation5 + $0x50] sm:$0xff]  ;;  %v352_v12 = vld [vmem:[#allocation5 + $0x38] sm:$0xff]  ;;  %v350_v14 = vld [vmem:[#allocation5 + $0x28] sm:$0xff]  ;;  %s1160_s30 = sshll.u32 %s1236_s28, 4  ;;  %s1161_s30 = int_to_ptr.vmem [resolvable:$false] %s1160_s30 }
  0x6b   : > { %860 = vmatprep.subr.mxu0 %v358_v2  ;;  %892 = vmatpush3.msra.mxu1 %v468_v6  ;;  %v351_v13 = vld [vmem:[#allocation5 + $0x30] sm:$0xff]  ;;  %v349_v15 = vld [vmem:[#allocation5 + $0x20] sm:$0xff]  ;;  %v348_v16 = vld [vmem:[#allocation5 + $0x18] sm:$0xff]  ;;  %p1158_p12 = pnand %p1157_p7, %p1538_p1  ;;  %s1162_s9 = scalar_lea.vmem %s1161_s30, 512 }
  0x6c   : > { %861 = vmatpush3.msra.mxu0 %v358_v2  ;;  %893 = vmatprep.subr.mxu1 %v467_v7  ;;  %v347_v17 = vld [vmem:[#allocation5 + $0x10] sm:$0xff]  ;;  %v346_v18 = vld [vmem:[#allocation5 + $0x8] sm:$0xff]  ;;  %v345_v19 = vld [vmem:[#allocation5] sm:$0xff]  ;;  %p1163_p13 = scmp.lt.s32.totalorder %s1460_s21, %s1161_s30  ;;  %p1164_p0 = scmp.lt.s32.totalorder %s1162_s9, %s1156_s1 }
  0x6d   : > { %862 = vmatprep.subr.mxu0 %v357_v3  ;;  %894 = vmatpush3.msra.mxu1 %v467_v7  ;;  %v344_v20 = vld [vmem:[%s1432_s12 + $0x8] sm:$0xff]  ;;  %v465_v21 = vld [vmem:[#allocation7 + $0x60] sm:$0xff]  ;;  %v463_v23 = vld [vmem:[#allocation7 + $0x50] sm:$0xff]  ;;  %s662_s12 = scalar_lea.sflag [#allocation4], %s1426_s19  ;;  %p1159_p9 = pneg %p1158_p12 }
  0x6e   : > { %863 = vmatpush3.msra.mxu0 %v357_v3  ;;  %895 = vmatprep.subr.mxu1 %v466_v9  ;;  %v464_v22 = vld [vmem:[#allocation7 + $0x58] sm:$0xff]  ;;  %v462_v24 = vld [vmem:[#allocation7 + $0x48] sm:$0xff]  ;;  %v461_v25 = vld [vmem:[#allocation7 + $0x40] sm:$0xff]  ;;  %p1165_p2 = por %p1164_p0, %p1163_p13 }
  0x6f   : > { %864 = vmatprep.subr.mxu0 %v356_v5  ;;  %896 = vmatpush3.msra.mxu1 %v466_v9  ;;  %v460_v26 = vld [vmem:[#allocation7 + $0x38] sm:$0xff]  ;;  %v459_v27 = vld [vmem:[#allocation7 + $0x30] sm:$0xff]  ;;  %v458_v28 = vld [vmem:[#allocation7 + $0x28] sm:$0xff] }
  0x70   : > { %865 = vmatpush3.msra.mxu0 %v356_v5  ;;  %897 = vmatprep.subr.mxu1 %v465_v21  ;;  %v457_v29 = vld [vmem:[#allocation7 + $0x20] sm:$0xff]  ;;  %v456_v30 = vld [vmem:[#allocation7 + $0x18] sm:$0xff]  ;;  %v455_v31 = vld [vmem:[#allocation7 + $0x10] sm:$0xff]  ;;  %p1166_p10 = pnand %p1165_p2, %p1159_p9 }
  0x71   : > { %866 = vmatprep.subr.mxu0 %v355_v8  ;;  %898 = vmatpush3.msra.mxu1 %v465_v21  ;;  %v454_v32 = vld [vmem:[#allocation7 + $0x8] sm:$0xff]  ;;  %v453_v33 = vld [vmem:[#allocation7] sm:$0xff]  ;;  %v576_v34 = vld [vmem:[#allocation8 + $0x78] sm:$0xff] }
  0x72   : > { %867 = vmatpush3.msra.mxu0 %v355_v8  ;;  %899 = vmatprep.subr.mxu1 %v464_v22  ;;  %v575_v35 = vld [vmem:[#allocation8 + $0x70] sm:$0xff]  ;;  %v574_v36 = vld [vmem:[#allocation8 + $0x68] sm:$0xff]  ;;  %v792_v37 = vld [vmem:[%s1510_s2] ss:$0 sm:$0xff] }
  0x73   : > { %868 = vmatprep.subr.mxu0 %v354_v10  ;;  %900 = vmatpush3.msra.mxu1 %v464_v22  ;;  %v573_v52 = vld [vmem:[#allocation8 + $0x60] sm:$0xff]  ;;  %v572_v53 = vld [vmem:[#allocation8 + $0x58] sm:$0xff]  ;;  %v571_v54 = vld [vmem:[#allocation8 + $0x50] sm:$0xff] }
  0x74   : > { %869 = vmatpush3.msra.mxu0 %v354_v10  ;;  %901 = vmatprep.subr.mxu1 %v463_v23  ;;  %v570_v55 = vld [vmem:[#allocation8 + $0x48] sm:$0xff]  ;;  %v569_v56 = vld [vmem:[#allocation8 + $0x40] sm:$0xff]  ;;  %v568_v57 = vld [vmem:[#allocation8 + $0x38] sm:$0xff] }
  0x75   : > { %870 = vmatprep.subr.mxu0 %v353_v11  ;;  %902 = vmatpush3.msra.mxu1 %v463_v23  ;;  %v567_v58 = vld [vmem:[#allocation8 + $0x30] sm:$0xff]  ;;  %v566_v59 = vld [vmem:[#allocation8 + $0x28] sm:$0xff]  ;;  %v565_v60 = vld [vmem:[#allocation8 + $0x20] sm:$0xff] }
  0x76   : > { %871 = vmatpush3.msra.mxu0 %v353_v11  ;;  %903 = vmatprep.subr.mxu1 %v462_v24  ;;  %v564_v61 = vld [vmem:[#allocation8 + $0x18] sm:$0xff]  ;;  %v563_v62 = vld [vmem:[#allocation8 + $0x10] sm:$0xff]  ;;  %v562_v63 = vld [vmem:[#allocation8 + $0x8] sm:$0xff] }
  0x77   : > { %872 = vmatprep.subr.mxu0 %v352_v12  ;;  %904 = vmatpush3.msra.mxu1 %v462_v24  ;;  %v561_v0 = vld [vmem:[#allocation8] sm:$0xff] }
  0x78   : > { %873 = vmatpush3.msra.mxu0 %v352_v12  ;;  %905 = vmatprep.subr.mxu1 %v461_v25  ;;  %v793_v1 = vld [vmem:[%s1512_s4] ss:$0 sm:$0xff] }
  0x79   : > { %874 = vmatprep.subr.mxu0 %v351_v13  ;;  %906 = vmatpush3.msra.mxu1 %v461_v25 }
  0x7a   : > { %875 = vmatpush3.msra.mxu0 %v351_v13  ;;  %907 = vmatprep.subr.mxu1 %v460_v26 }
  0x7b   : > { %876 = vmatprep.subr.mxu0 %v350_v14  ;;  %908 = vmatpush3.msra.mxu1 %v460_v26 }
  0x7c   : > { %877 = vmatpush3.msra.mxu0 %v350_v14  ;;  %909 = vmatprep.subr.mxu1 %v459_v27 }
  0x7d   : > { %878 = vmatprep.subr.mxu0 %v349_v15  ;;  %910 = vmatpush3.msra.mxu1 %v459_v27 }
  0x7e   : > { %879 = vmatpush3.msra.mxu0 %v349_v15  ;;  %911 = vmatprep.subr.mxu1 %v458_v28 }
  0x7f   : > { %880 = vmatprep.subr.mxu0 %v348_v16  ;;  %912 = vmatpush3.msra.mxu1 %v458_v28 }
  0x80   : > { %881 = vmatpush3.msra.mxu0 %v348_v16  ;;  %913 = vmatprep.subr.mxu1 %v457_v29  ;;  %v794_v16 = vld [vmem:[%s1514_s6] ss:$0 sm:$0xff] }
  0x81   : > { %882 = vmatprep.subr.mxu0 %v347_v17  ;;  %914 = vmatpush3.msra.mxu1 %v457_v29 }
  0x82   : > { %883 = vmatpush3.msra.mxu0 %v347_v17  ;;  %915 = vmatprep.subr.mxu1 %v456_v30 }
  0x83   : > { %884 = vmatprep.subr.mxu0 %v346_v18  ;;  %916 = vmatpush3.msra.mxu1 %v456_v30 }
  0x84   : > { %885 = vmatpush3.msra.mxu0 %v346_v18  ;;  %917 = vmatprep.subr.mxu1 %v455_v31 }
  0x85   : > { %886 = vmatprep.subr.mxu0 %v345_v19  ;;  %918 = vmatpush3.msra.mxu1 %v455_v31 }
  0x86   : > { %887 = vmatpush3.msra.mxu0 %v345_v19  ;;  %919 = vmatprep.subr.mxu1 %v454_v32 }
  0x87   : > { %889 = vmatmul.mubr.f32.vlgmr.msra.gmra.mxu0 %v344_v20  ;;  %920 = vmatpush3.msra.mxu1 %v454_v32 }
  0x88   : > { %921 = vmatprep.subr.mxu1 %v453_v33  ;;  %926 = vmatprep.subr.mxu0 %v576_v34 }
  0x89   : > { %922 = vmatpush3.msra.mxu1 %v453_v33  ;;  %927 = vmatpush3.msra.mxu0 %v576_v34 }
  0x8a   : > { %928 = vmatprep.subr.mxu0 %v575_v35 }
  0x8b   : > { %929 = vmatpush3.msra.mxu0 %v575_v35 }
  0x8c   : > { %930 = vmatprep.subr.mxu0 %v574_v36 }
  0x8d   : > { %931 = vmatpush3.msra.mxu0 %v574_v36 }
  0x8e   : > { %932 = vmatprep.subr.mxu0 %v573_v52 }
  0x8f   : > { %933 = vmatpush3.msra.mxu0 %v573_v52 }
  0x90   : > { %934 = vmatprep.subr.mxu0 %v572_v53 }
  0x91   : > { %935 = vmatpush3.msra.mxu0 %v572_v53 }
  0x92   : > { %936 = vmatprep.subr.mxu0 %v571_v54 }
  0x93   : > { %937 = vmatpush3.msra.mxu0 %v571_v54 }
  0x94   : > { %938 = vmatprep.subr.mxu0 %v570_v55 }
  0x95   : > { %939 = vmatpush3.msra.mxu0 %v570_v55 }
  0x96   : > { %940 = vmatprep.subr.mxu0 %v569_v56 }
  0x97   : > { %941 = vmatpush3.msra.mxu0 %v569_v56 }
  0x98   : > { %942 = vmatprep.subr.mxu0 %v568_v57 }
  0x99   : > { %943 = vmatpush3.msra.mxu0 %v568_v57 }
  0x9a   : > { %944 = vmatprep.subr.mxu0 %v567_v58 }
  0x9b   : > { %945 = vmatpush3.msra.mxu0 %v567_v58 }
  0x9c   : > { %946 = vmatprep.subr.mxu0 %v566_v59 }
  0x9d   : > { %947 = vmatpush3.msra.mxu0 %v566_v59 }
  0x9e   : > { %948 = vmatprep.subr.mxu0 %v565_v60 }
  0x9f   : > { %949 = vmatpush3.msra.mxu0 %v565_v60 }
  0xa0   : > { %950 = vmatprep.subr.mxu0 %v564_v61 }
  0xa1   : > { %951 = vmatpush3.msra.mxu0 %v564_v61 }
  0xa2   : > { %952 = vmatprep.subr.mxu0 %v563_v62 }
  0xa3   : > { %953 = vmatpush3.msra.mxu0 %v563_v62 }
  0xa4   : > { %954 = vmatprep.subr.mxu0 %v562_v63 }
  0xa5   : > { %955 = vmatpush3.msra.mxu0 %v562_v63 }
  0xa6   : > { %956 = vmatprep.subr.mxu0 %v561_v0 }
  0xa7   : > { %957 = vmatpush3.msra.mxu0 %v561_v0 }
 0x147   : > { %v890_v38 = vpop.f32.mrf.mxu0 }
 0x148   : > { %v440_v39 = vadd.f32 %v890_v38, %v792_v37 }
 0x149   : > { %v434_v40 = vpop.f32.mrf.mxu0 }
 0x14a   : > { %v446_v41 = vmul.f32 0.70710677, %v440_v39  ;;  %v435_v42 = vadd.f32 %v792_v37, %v434_v40  ;;  %v444_v49 = vmul.f32 0.5, %v440_v39 }
 0x14c   : > { %1042 = verf.f32 %v446_v41  ;;  %v445_v43 = vmul.f32 0.70710677, %v435_v42  ;;  %v443_v47 = vmul.f32 0.5, %v435_v42 }
 0x14e   : > { %1044 = verf.f32 %v445_v43 }
 0x159   : > { %v1043_v44 = vpop.eup %1042 }
 0x15a   : > { %v450_v46 = vadd.f32 1.0, %v1043_v44 }
 0x15b   : > { %v1045_v45 = vpop.eup %1044 }
 0x15c   : > { %v449_v48 = vadd.f32 1.0, %v1045_v45  ;;  %v452_v51 = vmul.f32 %v450_v46, %v444_v49 }
 0x15e   : > { %v451_v50 = vmul.f32 %v449_v48, %v443_v47 }
 0x160   : > { %923 = vmatprep.mubr.f32.mxu1 %v451_v50 }
 0x161   : > { %924 = vmatmul.mubr.f32.vlgmr.msra.gmra.mxu1 %v452_v51 }
 0x221   : > { %v925_v2 = vpop.f32.mrf.mxu1 }
 0x222   : > { %v548_v3 = vadd.f32 %v925_v2, %v793_v1 }
 0x223   : > { %v542_v4 = vpop.f32.mrf.mxu1 }
 0x224   : > { %v554_v5 = vmul.f32 0.70710677, %v548_v3  ;;  %v543_v6 = vadd.f32 %v793_v1, %v542_v4  ;;  %v552_v13 = vmul.f32 0.5, %v548_v3 }
 0x226   : > { %1046 = verf.f32 %v554_v5  ;;  %v553_v7 = vmul.f32 0.70710677, %v543_v6  ;;  %v551_v11 = vmul.f32 0.5, %v543_v6 }
 0x228   : > { %1048 = verf.f32 %v553_v7 }
 0x233   : > { %v1047_v8 = vpop.eup %1046 }
 0x234   : > { %v558_v10 = vadd.f32 1.0, %v1047_v8 }
 0x235   : > { %v1049_v9 = vpop.eup %1048 }
 0x236   : > { %v557_v12 = vadd.f32 1.0, %v1049_v9  ;;  %v560_v15 = vmul.f32 %v558_v10, %v552_v13 }
 0x238   : > { %v559_v14 = vmul.f32 %v557_v12, %v551_v11 }
 0x23a   : > { %958 = vmatprep.mubr.f32.mxu0 %v559_v14 }
 0x23b   : > { %959 = vmatmul.mubr.f32.vlgmr.msra.gmra.mxu0 %v560_v15 }
 0x2fb   : > { %v960_v17 = vpop.f32.mrf.mxu0 }
 0x2fc   : > { %v656_v18 = vadd.f32 %v960_v17, %v794_v16 }
 0x2fd   : > { %v650_v19 = vpop.f32.mrf.mxu0 }
 0x2fe   : > { %660 = vst [vmem:[%s340_s11 + $0x8] sm:$0xff] %v656_v18  ;;  %v651_v20 = vadd.f32 %v794_v16, %v650_v19 }
 0x300   : > { %659 = vst [vmem:[%s340_s11] sm:$0xff] %v651_v20 }
 0x301   : > { %1169 = shalt.err (!%p1166_p10)
}
 0x302   : > { %s1170_s10 = scalar_lea.hbm %s1465_s16, 256  ;;  %s1174_s29 = scalar_lea.hbm %s1515_s7, 512 }
 0x303   : > { %p1171_p6 = scmp.ne.s32.totalorder %s1465_s16, %s1170_s10  ;;  %p1175_p3 = scmp.lt.s32.totalorder %s1465_s16, %s1515_s7 }
 0x304   : > { %p1176_p11 = scmp.lt.s32.totalorder %s1174_s29, %s1170_s10 }
 0x305   : > { %p1172_p4 = pnand %p1171_p6, %p1538_p1 }
 0x306   : > { %p1177_p5 = por %p1176_p11, %p1175_p3 }
 0x307   : > { %p1173_p8 = pneg %p1172_p4 }
 0x309   : > { %p1178_p7 = pnand %p1177_p5, %p1173_p8 }
 0x30b   : > { %1181 = shalt.err (!%p1178_p7)
}
 0x30c   : > { %s1237_s18 = smov 128   ;;  %s1238_s23 = smov 8  }
 0x30d   : > { %975 = dma.vmem_to_hbm [thread:$0]  (%p1538_p1), %s1460_s21, 256, %s1465_s16, %s662_s12, %s1237_s18, %s1237_s18, %s1238_s23  }
 0x30e PF: > { %s690_s1 = sand.u32 1, %s1216_s24   ;;  %p1539_p12 = scmp.ne.s32.totalorder %s1524_s8, 0 }
 0x30f   : > { %p1540_p9 = scmp.ge.s32.totalorder %s1228_s27, 2  ;;  %s691_s28 = scalar_lea.sflag [#allocation4], %s690_s1 }
 0x311   : > { %p992_p13 = pnand %p1540_p9, %p1539_p12 }
 0x313   : > { %p993_p0 = pneg %p992_p13 }
 0x315   : > { %1211 = dma.done.wait (%p993_p0), %s691_s28, 256  }
 0x316   : > { %1213 = vsyncadd (%p993_p0), %s691_s28, 4294967040  ;;  %p22_p2 = scmp.ge.s32.totalorder %s1368_s14, 4   ;;  %s1541_s24 = smov %s1220_s25 }
 0x317   : > { %s1542_s25 = smov %s1224_s26  ;;  %s1543_s26 = smov %s1378_s17 }
 0x318   : > { %s1544_s27 = smov %s1368_s14  ;;  %24 = sbr.rel (!%p22_p2) target bundleno = 9 (0x9), region = 105 }
 0x31d   :  { %696 = vsyncpa [#allocation3], 1 }
 0x31e   :  { %698 = vsyncpa [#allocation3 + $0x1], 1 }
 0x31f   :  { %699 = vsyncpa [#allocation6], 1 }
 0x320   :  { %700 = vsyncpa [#allocation9], 1 }
 0x321   :  { %701 = vsyncpa [#allocation4], 1 }
 0x322   :  { %703 = vsyncpa [#allocation4 + $0x1], 1 }

</bundles_post_ra>
